<compile_context>
chip_gen: v7x
topology: tpu7x:2x2x1
jax: 0.10.0
libtpu: 0.0.40
codegen_flags: <defaults>
</compile_context>

<pallas_src>
import functools

import jax
import jax.numpy as jnp
from jax.experimental import pallas as pl
from jax.experimental.pallas import tpu as pltpu

_HIDDEN = 256
_LANE = 128
_SUBLANE = 8


def _round_up(x, m):
    return ((x + m - 1) // m) * m


def _actor_kernel(x_ref, w1_ref, b1_ref, w2_ref, b2_ref, w3_ref, b3_ref,
                  ac_lim_ref, out_ref):
    """relu(xW1+b1) -> relu(.W2+b2) -> tanh(.W3+b3)*ac_lim.

    Matmul operands are bf16 (native MXU path); accumulation and all
    elementwise math (bias add, relu, tanh, scale) are f32.
    """
    x = x_ref[...].astype(jnp.bfloat16)

    # fc1 + relu
    h1 = jnp.dot(x, w1_ref[...], preferred_element_type=jnp.float32)
    h1 = jnp.maximum(h1 + b1_ref[...], 0.0)

    # fc2 + relu
    h2 = jnp.dot(h1.astype(jnp.bfloat16), w2_ref[...],
                 preferred_element_type=jnp.float32)
    h2 = jnp.maximum(h2 + b2_ref[...], 0.0)

    # fc3 + tanh * ac_lim
    h3 = jnp.dot(h2.astype(jnp.bfloat16), w3_ref[...],
                 preferred_element_type=jnp.float32)
    action = jnp.tanh(h3 + b3_ref[...]) * ac_lim_ref[0]

    out_ref[...] = action.astype(out_ref.dtype)


@functools.partial(jax.jit, static_argnames=("ac_dim",))
def actor_forward(x, packed_params, ac_lim, *, ac_dim):
    """x: [B, obs_dim] f32; packed_params from pack_actor_params.

    Returns (action [B, ac_dim] f32, None) — matches Actor.forward.
    """
    w1, b1, w2, b2, w3, b3 = packed_params
    B, obs_dim = x.shape
    H = w1.shape[1]
    ac_pad = w3.shape[1]          # already a multiple of 128 (lane-dense)

    # Batch tile: multiple of 8 sublanes, capped at 256 (2x256 MXU height on
    # v6e/v7x; also a multiple of 128 for v5e's 4x128 MXU).
    TB = min(256, _round_up(max(B, 1), _SUBLANE))
    B_pad = _round_up(B, TB)
    if B_pad != B:
        x = jnp.pad(x, ((0, B_pad - B), (0, 0)))

    ac_lim_arr = jnp.asarray([ac_lim], dtype=jnp.float32)

    out_padded = pl.pallas_call(
        _actor_kernel,
        out_shape=jax.ShapeDtypeStruct((B_pad, ac_pad), jnp.float32),
        grid_spec=pltpu.PrefetchScalarGridSpec(
            num_scalar_prefetch=0,
            grid=(B_pad // TB,),
            in_specs=[
                # activations: tiled along batch -> double-buffered by Pallas
                pl.BlockSpec((TB, obs_dim), lambda i: (i, 0)),
                # weights / biases: constant block index -> stay VMEM-resident
                pl.BlockSpec((obs_dim, H), lambda i: (0, 0)),
                pl.BlockSpec((1, H), lambda i: (0, 0)),
                pl.BlockSpec((H, H), lambda i: (0, 0)),
                pl.BlockSpec((1, H), lambda i: (0, 0)),
                pl.BlockSpec((H, ac_pad), lambda i: (0, 0)),
                pl.BlockSpec((1, ac_pad), lambda i: (0, 0)),
                # ac_lim scalar in SMEM
                pl.BlockSpec(memory_space=pltpu.SMEM),
            ],
            out_specs=pl.BlockSpec((TB, ac_pad), lambda i: (i, 0)),
        ),
        compiler_params=pltpu.CompilerParams(
            # batch axis is independent -> shard across TCs on v7x megacore
            dimension_semantics=("parallel",),
        ),
    )(x, w1, b1, w2, b2, w3, b3, ac_lim_arr)

    return out_padded[:B, :ac_dim], None


def init_actor_params(key, obs_dim, ac_dim, hidden=_HIDDEN):
    """nn.Linear-style init (uniform +/- 1/sqrt(fan_in)); weights are [in, out]."""
    keys = jax.random.split(key, 6)

    def linear(kw, kb, fan_in, fan_out):
        bound = 1.0 / jnp.sqrt(float(fan_in))
        w = jax.random.uniform(kw, (fan_in, fan_out), jnp.float32, -bound, bound)
        b = jax.random.uniform(kb, (fan_out,), jnp.float32, -bound, bound)
        return w, b

    w1, b1 = linear(keys[0], keys[1], obs_dim, hidden)
    w2, b2 = linear(keys[2], keys[3], hidden, hidden)
    w3, b3 = linear(keys[4], keys[5], hidden, ac_dim)
    return (w1, b1, w2, b2, w3, b3)


def pack_actor_params(params, ac_dim):
    """One-time packing for the kernel: bf16 weights, (1, N) f32 biases,
    fc3 output padded to a lane-dense multiple of 128 columns."""
    w1, b1, w2, b2, w3, b3 = params
    ac_pad = _round_up(ac_dim, _LANE)
    w3p = jnp.zeros((w3.shape[0], ac_pad), jnp.float32).at[:, :ac_dim].set(w3)
    b3p = jnp.zeros((ac_pad,), jnp.float32).at[:ac_dim].set(b3)
    return (
        w1.astype(jnp.bfloat16), b1.reshape(1, -1).astype(jnp.float32),
        w2.astype(jnp.bfloat16), b2.reshape(1, -1).astype(jnp.float32),
        w3p.astype(jnp.bfloat16), b3p.reshape(1, -1).astype(jnp.float32),
    )


def _reference_forward_packed(x, packed_params, ac_lim):
    """Pure-JAX reference with the same bf16-matmul / f32-accumulate recipe."""
    w1, b1, w2, b2, w3, b3 = packed_params
    h = jnp.dot(x.astype(jnp.bfloat16), w1, preferred_element_type=jnp.float32)
    h = jnp.maximum(h + b1, 0.0)
    h = jnp.dot(h.astype(jnp.bfloat16), w2, preferred_element_type=jnp.float32)
    h = jnp.maximum(h + b2, 0.0)
    h = jnp.dot(h.astype(jnp.bfloat16), w3, preferred_element_type=jnp.float32)
    return jnp.tanh(h + b3) * ac_lim


def _reference_forward_f32(x, params, ac_lim):
    w1, b1, w2, b2, w3, b3 = params
    h = jnp.maximum(x @ w1 + b1, 0.0)
    h = jnp.maximum(h @ w2 + b2, 0.0)
    return jnp.tanh(h @ w3 + b3) * ac_lim


if __name__ == "__main__":
    obs_dim = 16
    ac_dim = 8
    ac_lim = 2.0
    batch = 2

    key = jax.random.PRNGKey(0)
    k_params, k_x = jax.random.split(key)

    params = init_actor_params(k_params, obs_dim, ac_dim)
    packed = pack_actor_params(params, ac_dim)
    x = jax.random.normal(k_x, (batch, obs_dim), dtype=jnp.float32)

    action, extra = actor_forward(x, packed, ac_lim, ac_dim=ac_dim)
    action = jax.block_until_ready(action)
    assert extra is None
    assert action.shape == (batch, ac_dim)
    assert action.dtype == jnp.float32

    # Matches the same bf16-matmul recipe closely...
    ref_bf16 = _reference_forward_packed(x, packed, ac_lim)[:, :ac_dim]
    assert jnp.allclose(action, ref_bf16, atol=1e-2, rtol=1e-2), \
        "mismatch vs bf16 JAX reference"
    # ...and the full-f32 reference within bf16-weight tolerance.
    ref_f32 = _reference_forward_f32(x, params, ac_lim)
    assert jnp.allclose(action, ref_f32, atol=5e-2, rtol=5e-2), \
        "mismatch vs f32 JAX reference"

    print("KERNEL_OK")
</pallas_src>

<mosaic_0001>
module attributes {stable_mosaic.version = 11 : i64} {
  func.func @_actor_kernel(%arg0: i32, %arg1: memref<8x16xf32, #tpu.memory_space<vmem>>, %arg2: memref<16x256xbf16, #tpu.memory_space<vmem>>, %arg3: memref<1x256xf32, #tpu.memory_space<vmem>>, %arg4: memref<256x256xbf16, #tpu.memory_space<vmem>>, %arg5: memref<1x256xf32, #tpu.memory_space<vmem>>, %arg6: memref<256x128xbf16, #tpu.memory_space<vmem>>, %arg7: memref<1x128xf32, #tpu.memory_space<vmem>>, %arg8: memref<1xf32, #tpu.memory_space<smem>>, %arg9: memref<8x128xf32, #tpu.memory_space<vmem>>) attributes {dimension_semantics = [#tpu.dimension_semantics<parallel>], iteration_bounds = array<i64: 1>, scalar_prefetch = 0 : i64, scratch_operands = 0 : i64, tpu.core_type = #tpu.core_type<tc>, window_params = [{transform_indices = @transform_0, window_bounds = array<i64: 8, 16>}, {pipeline_mode = #tpu.pipeline_mode<synchronous>, transform_indices = @transform_1, window_bounds = array<i64: 16, 256>}, {pipeline_mode = #tpu.pipeline_mode<synchronous>, transform_indices = @transform_2, window_bounds = array<i64: 1, 256>}, {pipeline_mode = #tpu.pipeline_mode<synchronous>, transform_indices = @transform_3, window_bounds = array<i64: 256, 256>}, {pipeline_mode = #tpu.pipeline_mode<synchronous>, transform_indices = @transform_4, window_bounds = array<i64: 1, 256>}, {pipeline_mode = #tpu.pipeline_mode<synchronous>, transform_indices = @transform_5, window_bounds = array<i64: 256, 128>}, {pipeline_mode = #tpu.pipeline_mode<synchronous>, transform_indices = @transform_6, window_bounds = array<i64: 1, 128>}, {transform_indices = @transform_7, window_bounds = array<i64: 1>}, {transform_indices = @transform_8, window_bounds = array<i64: 8, 128>}]} {
    %c0 = arith.constant 0 : index
    %c0_0 = arith.constant 0 : index
    %0 = vector.load %arg1[%c0, %c0_0] : memref<8x16xf32, #tpu.memory_space<vmem>>, vector<8x16xf32>
    %1 = arith.truncf %0 : vector<8x16xf32> to vector<8x16xbf16>
    %c0_1 = arith.constant 0 : index
    %c0_2 = arith.constant 0 : index
    %2 = vector.load %arg2[%c0_1, %c0_2] : memref<16x256xbf16, #tpu.memory_space<vmem>>, vector<16x256xbf16>
    %cst = arith.constant dense<0.000000e+00> : vector<8x256xf32>
    %3 = tpu.matmul %1, %2, %cst {dimension_numbers = #tpu.dot_dimension_numbers<[1], [0], [0], [1], [0, 0, 1, 1], [], []>} : vector<8x16xbf16>, vector<16x256xbf16>, vector<8x256xf32> -> vector<8x256xf32>
    %c0_3 = arith.constant 0 : index
    %c0_4 = arith.constant 0 : index
    %4 = vector.load %arg3[%c0_3, %c0_4] : memref<1x256xf32, #tpu.memory_space<vmem>>, vector<1x256xf32>
    %5 = vector.broadcast %4 : vector<1x256xf32> to vector<8x256xf32>
    %6 = arith.addf %3, %5 : vector<8x256xf32>
    %cst_5 = arith.constant 0.000000e+00 : f32
    %7 = vector.broadcast %cst_5 : f32 to vector<8x256xf32>
    %8 = arith.maximumf %6, %7 : vector<8x256xf32>
    %9 = arith.truncf %8 : vector<8x256xf32> to vector<8x256xbf16>
    %c0_6 = arith.constant 0 : index
    %c0_7 = arith.constant 0 : index
    %10 = vector.load %arg4[%c0_6, %c0_7] : memref<256x256xbf16, #tpu.memory_space<vmem>>, vector<256x256xbf16>
    %cst_8 = arith.constant dense<0.000000e+00> : vector<8x256xf32>
    %11 = tpu.matmul %9, %10, %cst_8 {dimension_numbers = #tpu.dot_dimension_numbers<[1], [0], [0], [1], [0, 0, 1, 1], [], []>} : vector<8x256xbf16>, vector<256x256xbf16>, vector<8x256xf32> -> vector<8x256xf32>
    %c0_9 = arith.constant 0 : index
    %c0_10 = arith.constant 0 : index
    %12 = vector.load %arg5[%c0_9, %c0_10] : memref<1x256xf32, #tpu.memory_space<vmem>>, vector<1x256xf32>
    %13 = vector.broadcast %12 : vector<1x256xf32> to vector<8x256xf32>
    %14 = arith.addf %11, %13 : vector<8x256xf32>
    %cst_11 = arith.constant 0.000000e+00 : f32
    %15 = vector.broadcast %cst_11 : f32 to vector<8x256xf32>
    %16 = arith.maximumf %14, %15 : vector<8x256xf32>
    %17 = arith.truncf %16 : vector<8x256xf32> to vector<8x256xbf16>
    %c0_12 = arith.constant 0 : index
    %c0_13 = arith.constant 0 : index
    %18 = vector.load %arg6[%c0_12, %c0_13] : memref<256x128xbf16, #tpu.memory_space<vmem>>, vector<256x128xbf16>
    %cst_14 = arith.constant dense<0.000000e+00> : vector<8x128xf32>
    %19 = tpu.matmul %17, %18, %cst_14 {dimension_numbers = #tpu.dot_dimension_numbers<[1], [0], [0], [1], [0, 0, 1, 1], [], []>} : vector<8x256xbf16>, vector<256x128xbf16>, vector<8x128xf32> -> vector<8x128xf32>
    %c0_15 = arith.constant 0 : index
    %c0_16 = arith.constant 0 : index
    %20 = vector.load %arg7[%c0_15, %c0_16] : memref<1x128xf32, #tpu.memory_space<vmem>>, vector<1x128xf32>
    %21 = vector.broadcast %20 : vector<1x128xf32> to vector<8x128xf32>
    %22 = arith.addf %19, %21 : vector<8x128xf32>
    %23 = math.tanh %22 : vector<8x128xf32>
    %c0_17 = arith.constant 0 : index
    %24 = memref.load %arg8[%c0_17] : memref<1xf32, #tpu.memory_space<smem>>
    %25 = vector.broadcast %24 : f32 to vector<8x128xf32>
    %26 = arith.mulf %23, %25 : vector<8x128xf32>
    %c0_18 = arith.constant 0 : index
    %c0_19 = arith.constant 0 : index
    %27 = vector.load %arg9[%c0_18, %c0_19] : memref<8x128xf32, #tpu.memory_space<vmem>>, vector<8x128xf32>
    tpu.vector_store %arg9[%c0_18, %c0_19], %26 {strides = array<i32>} : memref<8x128xf32, #tpu.memory_space<vmem>>, vector<8x128xf32>,
    return
  }
  func.func @transform_0(%arg0: i32) -> (i32, i32) {
    %c0_i32 = arith.constant 0 : i32
    %c0_i32_0 = arith.constant 0 : i32
    return %arg0, %c0_i32 : i32, i32
  }
  func.func @transform_1(%arg0: i32) -> (i32, i32) {
    %c0_i32 = arith.constant 0 : i32
    %c0_i32_0 = arith.constant 0 : i32
    %c0_i32_1 = arith.constant 0 : i32
    return %c0_i32, %c0_i32_0 : i32, i32
  }
  func.func @transform_2(%arg0: i32) -> (i32, i32) {
    %c0_i32 = arith.constant 0 : i32
    %c0_i32_0 = arith.constant 0 : i32
    %c0_i32_1 = arith.constant 0 : i32
    return %c0_i32, %c0_i32_0 : i32, i32
  }
  func.func @transform_3(%arg0: i32) -> (i32, i32) {
    %c0_i32 = arith.constant 0 : i32
    %c0_i32_0 = arith.constant 0 : i32
    %c0_i32_1 = arith.constant 0 : i32
    return %c0_i32, %c0_i32_0 : i32, i32
  }
  func.func @transform_4(%arg0: i32) -> (i32, i32) {
    %c0_i32 = arith.constant 0 : i32
    %c0_i32_0 = arith.constant 0 : i32
    %c0_i32_1 = arith.constant 0 : i32
    return %c0_i32, %c0_i32_0 : i32, i32
  }
  func.func @transform_5(%arg0: i32) -> (i32, i32) {
    %c0_i32 = arith.constant 0 : i32
    %c0_i32_0 = arith.constant 0 : i32
    %c0_i32_1 = arith.constant 0 : i32
    return %c0_i32, %c0_i32_0 : i32, i32
  }
  func.func @transform_6(%arg0: i32) -> (i32, i32) {
    %c0_i32 = arith.constant 0 : i32
    %c0_i32_0 = arith.constant 0 : i32
    %c0_i32_1 = arith.constant 0 : i32
    return %c0_i32, %c0_i32_0 : i32, i32
  }
  func.func @transform_7(%arg0: i32) -> i32 {
    %c0_i32 = arith.constant 0 : i32
    %c0_i32_0 = arith.constant 0 : i32
    return %c0_i32 : i32
  }
  func.func @transform_8(%arg0: i32) -> (i32, i32) {
    %c0_i32 = arith.constant 0 : i32
    %c0_i32_0 = arith.constant 0 : i32
    return %arg0, %c0_i32 : i32, i32
  }
}

</mosaic_0001>

<bundles_post_ra>
// kernel: actor_forward.1
= control target key start
LH: loop header
LB: loop body
LE: loop exit
PB: predicated region body
PF: predicated region fallthrough
CT: control target
= control target key end

     0   :  { %14 = vsyncpa [#allocation4], 0  ;;  %s867_s0 = inlined_call_operand.vmem [shape: f32[8,16], index: 0, kind: input, shape index: {}]   ;;  %s868_s1 = inlined_call_operand.vmem [shape: bf16[16,256], index: 1, kind: input, shape index: {}]   ;;  %s869_s2 = inlined_call_operand.vmem [shape: f32[1,256], index: 2, kind: input, shape index: {}]   ;;  %s870_s3 = inlined_call_operand.hbm [shape: bf16[256,256], index: 3, kind: input, shape index: {}]   ;;  %s871_s4 = inlined_call_operand.vmem [shape: f32[1,256], index: 4, kind: input, shape index: {}]   ;;  %s872_s5 = inlined_call_operand.hbm [shape: bf16[256,128], index: 5, kind: input, shape index: {}]   ;;  %s873_s6 = inlined_call_operand.vmem [shape: f32[1,128], index: 6, kind: input, shape index: {}]   ;;  %s874_s7 = inlined_call_operand.<no memory space> [shape: f32[1], index: 7, kind: input, shape index: {}]   ;;  %s875_s8 = inlined_call_operand.vmem [shape: f32[8,128], index: 8, kind: output, shape index: {}]  }
   0x1   :  { %15 = vsyncpa [#allocation6], 0  ;;  %s767_s27 = smov [#allocation3]   ;;  %s719_s9 = scalar_lea.hbm %s870_s3, 4096 }
   0x2   :  { %s27_s28 = sshll.u32 %s767_s27, 4  ;;  %p720_p0 = scmp.ne.s32.totalorder %s870_s3, %s719_s9  ;;  %s28_s28 = int_to_ptr.vmem [resolvable:$true] %s27_s28 }
   0x3   :  { %p723_p1 = scmp.lt.u32.totalorder %s719_s9, %s870_s3 }
   0x5   :  { %p725_p2 = pnand %p723_p1, %p720_p0 }
   0x7   :  { %728 = shalt.err (!%p725_p2)
}
   0x8   :  { %s729_s14 = scalar_lea.vmem %s28_s28, 4096  ;;  %p734_p4 = scmp.lt.s32.totalorder %s28_s28, %s28_s28 }
   0x9   :  { %p730_p3 = scmp.ne.s32.totalorder %s28_s28, %s729_s14  ;;  %p735_p5 = scmp.lt.s32.totalorder %s729_s14, %s729_s14 }
   0xb   :  { %p736_p6 = por %p735_p5, %p734_p4 }
   0xd   :  { %p737_p7 = pnand %p736_p6, %p730_p3 }
   0xf   :  { %740 = shalt.err (!%p737_p7)
}
  0x10   :  { %s768_s15 = smov 128   ;;  %s769_s16 = smov 8  }
  0x11   :  { %33 = dma.hbm_to_vmem [thread:$0]  %s870_s3, 4096, %s28_s28, [#allocation4], %s768_s15, %s768_s15, %s769_s16  }
  0x12   :  { %s770_s19 = smov [#allocation5]   ;;  %s741_s23 = scalar_lea.hbm %s872_s5, 2048 }
  0x13   :  { %s41_s20 = sshll.u32 %s770_s19, 4  ;;  %p742_p8 = scmp.ne.s32.totalorder %s872_s5, %s741_s23  ;;  %s42_s20 = int_to_ptr.vmem [resolvable:$true] %s41_s20 }
  0x14   :  { %p745_p9 = scmp.lt.u32.totalorder %s741_s23, %s872_s5 }
  0x16   :  { %p747_p10 = pnand %p745_p9, %p742_p8 }
  0x18   :  { %750 = shalt.err (!%p747_p10)
}
  0x19   :  { %s751_s29 = scalar_lea.vmem %s42_s20, 2048  ;;  %p756_p12 = scmp.lt.s32.totalorder %s42_s20, %s42_s20 }
  0x1a   :  { %p752_p11 = scmp.ne.s32.totalorder %s42_s20, %s751_s29  ;;  %p757_p13 = scmp.lt.s32.totalorder %s751_s29, %s751_s29 }
  0x1c   :  { %p758_p0 = por %p757_p13, %p756_p12 }
  0x1e   :  { %p759_p1 = pnand %p758_p0, %p752_p11 }
  0x20   :  { %762 = shalt.err (!%p759_p1)
}
  0x21   :  { %s771_s3 = smov 64   ;;  %s772_s28 = smov 4  }
  0x22   :  { %47 = dma.hbm_to_vmem [thread:$0]  %s872_s5, 2048, %s42_s20, [#allocation6], %s771_s3, %s771_s3, %s772_s28  }
  0x23   :  { %763 = dma.done.wait [#allocation4], 4096  }
  0x24   :  { %764 = vsyncadd [#allocation4], 4294963200 }
  0x25   :  { %765 = dma.done.wait [#allocation6], 2048  }
  0x26   :  { %766 = vsyncadd [#allocation6], 4294965248  ;;  %v773_v0 = vmov 0   ;;  %v650_v1 = vld [vmem:[%s868_s1 + $0x4] ss:$8 sps:$4 sm:$0xff]   ;;  %vm85_vm0 = vcmask 130048   ;;  %v65_v49 = vlaneseq }
  0x27   :  { %121 = vmatprep.mubr.bf16.mxu0 %v773_v0  ;;  %v652_v2 = vld [vmem:[%s868_s1] ss:$8 sps:$4 sm:$0xff]   ;;  %89 = vmatprep.subr.bf16.mxu0 %v650_v1  ;;  %v653_v5 = vld [vmem:[#allocation3 + $0x4] ss:$8 sps:$4 sm:$0xff]   ;;  %v656_v7 = vld [vmem:[#allocation3 + $0x14] ss:$8 sps:$4 sm:$0xff]  }
  0x28   :  { %v59_v3 = vld [vmem:[%s867_s0] sm:$0xff]  ;;  %90 = vmatpush1.bf16.msra.mxu0 %v652_v2  ;;  %338 = vmatprep.subr.bf16.mxu1 %v653_v5  ;;  %v658_v8 = vld [vmem:[#allocation3 + $0x10] ss:$8 sps:$4 sm:$0xff]   ;;  %v662_v11 = vld [vmem:[#allocation3 + $0x34] ss:$8 sps:$4 sm:$0xff]   ;;  %v66_v50 = vshrl.u32 %v65_v49, 7 }
  0x29   :  { %v60_v4 = vpack.c.bf16 %v59_v3, %v59_v3  ;;  %v655_v6 = vld [vmem:[#allocation3] ss:$8 sps:$4 sm:$0xff]   ;;  %v659_v9 = vld [vmem:[#allocation3 + $0x24] ss:$8 sps:$4 sm:$0xff]   ;;  %v664_v12 = vld [vmem:[#allocation3 + $0x30] ss:$8 sps:$4 sm:$0xff]  }
  0x2a   :  { %339 = vmatpush1.bf16.msra.mxu1 %v655_v6  ;;  %v661_v10 = vld [vmem:[#allocation3 + $0x20] ss:$8 sps:$4 sm:$0xff]   ;;  %v665_v13 = vld [vmem:[#allocation3 + $0x44] ss:$8 sps:$4 sm:$0xff]   ;;  %v668_v15 = vld [vmem:[#allocation3 + $0x54] ss:$8 sps:$4 sm:$0xff]  }
  0x2b   :  { %571 = vmatmul.mubr.msk.bf16.vlgmr.msra.gmra.mrb[0].mxu0 %vm85_vm0, %v60_v4  ;;  %340 = vmatprep.subr.bf16.mxu1 %v656_v7  ;;  %v667_v14 = vld [vmem:[#allocation3 + $0x40] ss:$8 sps:$4 sm:$0xff]   ;;  %v670_v16 = vld [vmem:[#allocation3 + $0x50] ss:$8 sps:$4 sm:$0xff]   ;;  %v671_v17 = vld [vmem:[#allocation3 + $0x64] ss:$8 sps:$4 sm:$0xff]  }
  0x2c   :  { %v673_v18 = vld [vmem:[#allocation3 + $0x60] ss:$8 sps:$4 sm:$0xff]   ;;  %v674_v19 = vld [vmem:[#allocation3 + $0x74] ss:$8 sps:$4 sm:$0xff]   ;;  %v676_v20 = vld [vmem:[#allocation3 + $0x70] ss:$8 sps:$4 sm:$0xff]  }
  0x2d   :  { %v677_v21 = vld [vmem:[#allocation3 + $0x84] ss:$8 sps:$4 sm:$0xff]   ;;  %v679_v22 = vld [vmem:[#allocation3 + $0x80] ss:$8 sps:$4 sm:$0xff]   ;;  %v680_v23 = vld [vmem:[#allocation3 + $0x94] ss:$8 sps:$4 sm:$0xff]  }
  0x2e   :  { %341 = vmatpush1.bf16.msra.mxu1 %v658_v8  ;;  %v682_v24 = vld [vmem:[#allocation3 + $0x90] ss:$8 sps:$4 sm:$0xff]   ;;  %v683_v25 = vld [vmem:[#allocation3 + $0xa4] ss:$8 sps:$4 sm:$0xff]   ;;  %v685_v26 = vld [vmem:[#allocation3 + $0xa0] ss:$8 sps:$4 sm:$0xff]  }
  0x2f   :  { %342 = vmatprep.subr.bf16.mxu1 %v659_v9  ;;  %v686_v27 = vld [vmem:[#allocation3 + $0xb4] ss:$8 sps:$4 sm:$0xff]   ;;  %v688_v28 = vld [vmem:[#allocation3 + $0xb0] ss:$8 sps:$4 sm:$0xff]   ;;  %v689_v29 = vld [vmem:[#allocation3 + $0xc4] ss:$8 sps:$4 sm:$0xff]  }
  0x30   :  { %v691_v30 = vld [vmem:[#allocation3 + $0xc0] ss:$8 sps:$4 sm:$0xff]   ;;  %v692_v31 = vld [vmem:[#allocation3 + $0xd4] ss:$8 sps:$4 sm:$0xff]   ;;  %v694_v32 = vld [vmem:[#allocation3 + $0xd0] ss:$8 sps:$4 sm:$0xff]  }
  0x31   :  { %v695_v33 = vld [vmem:[#allocation3 + $0xe4] ss:$8 sps:$4 sm:$0xff]   ;;  %v697_v34 = vld [vmem:[#allocation3 + $0xe0] ss:$8 sps:$4 sm:$0xff]   ;;  %v698_v35 = vld [vmem:[#allocation3 + $0xf4] ss:$8 sps:$4 sm:$0xff]  }
  0x32   :  { %343 = vmatpush1.bf16.msra.mxu1 %v661_v10  ;;  %v700_v36 = vld [vmem:[#allocation3 + $0xf0] ss:$8 sps:$4 sm:$0xff]   ;;  %v701_v37 = vld [vmem:[#allocation5 + $0x40] sm:$0xff]   ;;  %v703_v39 = vld [vmem:[#allocation5 + $0x48] sm:$0xff]   ;;  %v67_v51 = vsub.s32 0, %v66_v50  ;;  %v71_v53 = vsub.s32 1, %v66_v50 }
  0x33   :  { %344 = vmatprep.subr.bf16.mxu1 %v662_v11  ;;  %v702_v38 = vld [vmem:[#allocation5] sm:$0xff]   ;;  %621 = vmatprep.subr.bf16.mxu0 %v701_v37  ;;  %v704_v40 = vld [vmem:[#allocation5 + $0x8] sm:$0xff]   ;;  %v705_v41 = vld [vmem:[#allocation5 + $0x50] sm:$0xff]  }
  0x34   :  { %622 = vmatpush3.bf16.msra.mxu0 %v702_v38  ;;  %v706_v42 = vld [vmem:[#allocation5 + $0x10] sm:$0xff]   ;;  %v707_v43 = vld [vmem:[#allocation5 + $0x58] sm:$0xff]   ;;  %v709_v45 = vld [vmem:[#allocation5 + $0x60] sm:$0xff]  }
  0x35   :  { %623 = vmatprep.subr.bf16.mxu0 %v703_v39  ;;  %v708_v44 = vld [vmem:[#allocation5 + $0x18] sm:$0xff]   ;;  %v710_v46 = vld [vmem:[#allocation5 + $0x20] sm:$0xff]   ;;  %v711_v47 = vld [vmem:[#allocation5 + $0x68] sm:$0xff]  }
  0x36   :  { %345 = vmatpush1.bf16.msra.mxu1 %v664_v12  ;;  %v712_v48 = vld [vmem:[#allocation5 + $0x28] sm:$0xff]   ;;  %v63_v52 = vld [vmem:[%s869_s2] sm:$0x3]  ;;  %v713_v2 = vld [vmem:[#allocation5 + $0x70] sm:$0xff]  }
  0x37   :  { %346 = vmatprep.subr.bf16.mxu1 %v665_v13  ;;  %v68_v54 = vrot.slane %v63_v52, %v67_v51  ;;  %v72_v55 = vrot.slane %v63_v52, %v71_v53  ;;  %v714_v3 = vld [vmem:[#allocation5 + $0x30] sm:$0xff]   ;;  %v715_v4 = vld [vmem:[#allocation5 + $0x78] sm:$0xff]   ;;  %v166_v6 = vld [vmem:[%s871_s4] sm:$0x3] }
  0x38   :  { %624 = vmatpush3.bf16.msra.mxu0 %v704_v40  ;;  %v716_v5 = vld [vmem:[#allocation5 + $0x38] sm:$0xff]   ;;  %v171_v7 = vrot.slane %v166_v6, %v67_v51  ;;  %v175_v8 = vrot.slane %v166_v6, %v71_v53 }
  0x39   :  { %625 = vmatprep.subr.bf16.mxu0 %v705_v41 }
  0x3a   :  { %347 = vmatpush1.bf16.msra.mxu1 %v667_v14 }
  0x3b   :  { %348 = vmatprep.subr.bf16.mxu1 %v668_v15 }
  0x3c   :  { %626 = vmatpush3.bf16.msra.mxu0 %v706_v42 }
  0x3d   :  { %627 = vmatprep.subr.bf16.mxu0 %v707_v43 }
  0x3e   :  { %349 = vmatpush1.bf16.msra.mxu1 %v670_v16 }
  0x3f   :  { %350 = vmatprep.subr.bf16.mxu1 %v671_v17 }
  0x40   :  { %628 = vmatpush3.bf16.msra.mxu0 %v708_v44 }
  0x41   :  { %629 = vmatprep.subr.bf16.mxu0 %v709_v45 }
  0x42   :  { %351 = vmatpush1.bf16.msra.mxu1 %v673_v18 }
  0x43   :  { %352 = vmatprep.subr.bf16.mxu1 %v674_v19 }
  0x44   :  { %630 = vmatpush3.bf16.msra.mxu0 %v710_v46 }
  0x45   :  { %631 = vmatprep.subr.bf16.mxu0 %v711_v47 }
  0x46   :  { %353 = vmatpush1.bf16.msra.mxu1 %v676_v20  ;;  %v604_v20 = vld [vmem:[%s873_s6] ss:$0 sm:$0xff] }
  0x47   :  { %354 = vmatprep.subr.bf16.mxu1 %v677_v21 }
  0x48   :  { %632 = vmatpush3.bf16.msra.mxu0 %v712_v48 }
  0x49   :  { %633 = vmatprep.subr.bf16.mxu0 %v713_v2 }
  0x4a   :  { %355 = vmatpush1.bf16.msra.mxu1 %v679_v22 }
  0x4b   :  { %356 = vmatprep.subr.bf16.mxu1 %v680_v23 }
  0x4c   :  { %634 = vmatpush3.bf16.msra.mxu0 %v714_v3 }
  0x4d   :  { %635 = vmatprep.subr.bf16.mxu0 %v715_v4 }
  0x4e   :  { %357 = vmatpush1.bf16.msra.mxu1 %v682_v24 }
  0x4f   :  { %358 = vmatprep.subr.bf16.mxu1 %v683_v25 }
  0x50   :  { %636 = vmatpush3.bf16.msra.mxu0 %v716_v5 }
  0x52   :  { %359 = vmatpush1.bf16.msra.mxu1 %v685_v26  ;;  %v560_v26 = vstv %s874_s7 }
  0x53   :  { %360 = vmatprep.subr.bf16.mxu1 %v686_v27 }
  0x56   :  { %361 = vmatpush1.bf16.msra.mxu1 %v688_v28 }
  0x57   :  { %362 = vmatprep.subr.bf16.mxu1 %v689_v29 }
  0x5a   :  { %363 = vmatpush1.bf16.msra.mxu1 %v691_v30 }
  0x5b   :  { %364 = vmatprep.subr.bf16.mxu1 %v692_v31 }
  0x5e   :  { %365 = vmatpush1.bf16.msra.mxu1 %v694_v32 }
  0x5f   :  { %366 = vmatprep.subr.bf16.mxu1 %v695_v33 }
  0x62   :  { %367 = vmatpush1.bf16.msra.mxu1 %v697_v34 }
  0x63   :  { %368 = vmatprep.subr.bf16.mxu1 %v698_v35 }
  0x66   :  { %369 = vmatpush1.bf16.msra.mxu1 %v700_v36 }
  0xfe   :  { %v123_v56 = vpop.f32.mrb[0].mxu0 }
  0xff   :  { %v124_v57 = vadd.f32 %v123_v56, %v68_v54  ;;  %v125_v58 = vpop.f32.mrb[1].mxu0 }
 0x100   :  { %v126_v59 = vadd.f32 %v125_v58, %v72_v55  ;;  %v127_v60 = vpop.f32.mrb[2].mxu0 }
 0x101   :  { %v130_v61 = vmax.f32 %v124_v57, 0.0  ;;  %v128_v62 = vpop.f32.mrb[3].mxu0 }
 0x102   :  { %v131_v63 = vmax.f32 %v126_v59, 0.0 }
 0x103   :  { %v132_v1 = vpack.c.bf16 %v130_v61, %v130_v61 }
 0x104   :  { %v133_v0 = vpack.c.bf16 %v131_v63, %v131_v63 }
 0x106   :  { %370 = vmatprep.mubr.bf16.mxu1 %v133_v0 }
 0x107   :  { %371 = vmatmul.mubr.bf16.vlgmr.msra.gmra.mrb[0].mxu1 %v132_v1 }
 0x1da   :  { %v372_v9 = vpop.f32.mrb[0].mxu1 }
 0x1db   :  { %v373_v10 = vadd.f32 %v372_v9, %v171_v7  ;;  %v374_v11 = vpop.f32.mrb[1].mxu1 }
 0x1dc   :  { %v375_v12 = vadd.f32 %v374_v11, %v175_v8  ;;  %v376_v13 = vpop.f32.mrb[2].mxu1 }
 0x1dd   :  { %v379_v14 = vmax.f32 %v373_v10, 0.0  ;;  %v377_v15 = vpop.f32.mrb[3].mxu1 }
 0x1de   :  { %v380_v16 = vmax.f32 %v375_v12, 0.0 }
 0x1df   :  { %v381_v18 = vpack.c.bf16 %v379_v14, %v379_v14 }
 0x1e0   :  { %v382_v17 = vpack.c.bf16 %v380_v16, %v380_v16 }
 0x1e2   :  { %550 = vmatprep.mubr.bf16.mxu0 %v382_v17 }
 0x1e3   :  { %551 = vmatmul.mubr.bf16.vlgmr.msra.gmra.mrb[4].mxu0 %v381_v18 }
 0x2b6   :  { %v637_v19 = vpop.f32.mrb[4].mxu0 }
 0x2b7   :  { %v638_v21 = vpop.f32.mrb[5].mxu0 }
 0x2b8   :  { %v639_v22 = vadd.f32 %v638_v21, %v637_v19  ;;  %v640_v23 = vpop.f32.mrb[6].mxu0 }
 0x2b9   :  { %v641_v24 = vpop.f32.mrb[7].mxu0 }
 0x2ba   :  { %v553_v25 = vadd.f32 %v639_v22, %v604_v20 }
 0x2bc   :  { %717 = vtanh.f32 %v553_v25 }
 0x2c6   :  { %v718_v27 = vpop.eup %717 }
 0x2c7   :  { %v561_v28 = vmul.f32 %v718_v27, %v560_v26 }
 0x2c9   :  { %562 = vst [vmem:[%s875_s8] sm:$0xff] %v561_v28 }
 0x2ca   :  { %567 = vsyncpa [#allocation4], 1 }
 0x2cb   :  { %568 = vsyncpa [#allocation6], 1 }

</bundles_post_ra>
